<compile_context>
chip_gen: v5e
topology: v5e:2x2
jax: 0.10.0
libtpu: 0.0.40
codegen_flags: <defaults>
</compile_context>

<pallas_src>
import numpy as np
import jax
import jax.numpy as jnp
from jax.experimental import pallas as pl
from jax.experimental.pallas import tpu as pltpu

JITTER = 0.001


def _round_up(x, m):
    return m * ((x + m - 1) // m)


# ----------------------------------------------------------------------------
# Fused SVGP predict over a tile of TN test rows (transposed (MP, TN) layout).
#   E        = exp(-0.5 * ||xm_i - xte_j||^2)                      (MP, TN)
#   K_mt     = sf2 * E  (sf2 folded into the host-side operands below)
#   B        = (sf2 * Lm^{-1}) @ E        -> term1 = colsum(B*B)
#   mean     = (sf2 * Kinv @ qu_mean)^T @ E                        (1, TN)
#   v        = (sf2 * Kinv @ chole)^T @ E                          (1, TN)
#   yvar     = sf2 - term1 + v*v          (diag(K_tt) == sf2 for ARD SE)
# Zero-padded rows/cols of the Lm^{-1} / w_mean / w_var operands annihilate the
# garbage E rows produced by the (M -> MP) sublane padding.
# ----------------------------------------------------------------------------
def _svgp_predict_body(sf2_ref, xte_ref, xm_ref, sqm_ref, linv_ref,
                       wmu_ref, wvar_ref, out_ref):
    xte = xte_ref[...]            # (D, TN)   scaled test tile (transposed)
    xm = xm_ref[...]              # (MP, D)   scaled inducing points (padded)
    sqm = sqm_ref[...]            # (MP, 1)   precomputed ||xm_i||^2 (padded)

    sqt = jnp.sum(xte * xte, axis=0, keepdims=True)                 # (1, TN)
    cross = jnp.dot(xm, xte, preferred_element_type=jnp.float32)    # (MP, TN)
    d2 = jnp.maximum(sqm + sqt - 2.0 * cross, 0.0)
    e = jnp.exp(-0.5 * d2)                                          # (MP, TN)

    b = jnp.dot(linv_ref[...], e, preferred_element_type=jnp.float32)    # (MP, TN)
    mean_row = jnp.dot(wmu_ref[...], e, preferred_element_type=jnp.float32)  # (1, TN)
    v = jnp.dot(wvar_ref[...], e, preferred_element_type=jnp.float32)        # (1, TN)
    term1 = jnp.sum(b * b, axis=0, keepdims=True)                            # (1, TN)

    sf2 = sf2_ref[0]
    # Not clamped at 0 to stay faithful to the torch module's forward.
    var_row = sf2 - term1 + v * v

    out_ref[0:1, :] = mean_row
    out_ref[1:2, :] = var_row


# ----------------------------------------------------------------------------
# SVGP module (forward only).
# ----------------------------------------------------------------------------
def init_svgp_params(key, num_inducing, input_dim):
    k_xm, k_chole = jax.random.split(key)
    return {
        # torch.rand -> uniform [0, 1)
        "xm": jax.random.uniform(k_xm, (num_inducing, input_dim), jnp.float32),
        "qu_mean": jnp.zeros((num_inducing, 1), jnp.float32),
        "chole": jax.random.uniform(k_chole, (num_inducing, 1), jnp.float32),
        "log_beta": jnp.zeros((1,), jnp.float32),
        # ARD kernel hyperparameters (log lengthscales, log signal variance)
        "log_ls": jnp.zeros((input_dim,), jnp.float32),
        "log_sf2": jnp.zeros((1,), jnp.float32),
    }


def svgp_forward(params, Xte, *, max_row_tile=512):
    """SVGP predictive mean / variance; returns (mean, yvar), each (N, 1)."""
    xm = params["xm"].astype(jnp.float32)
    M, D = xm.shape
    N = Xte.shape[0]

    ls = jnp.exp(params["log_ls"]).astype(jnp.float32)              # (D,)
    sf2 = jnp.exp(params["log_sf2"]).astype(jnp.float32)            # (1,)
    sf2_s = sf2[0]
    xm_s = xm / ls                                                   # (M, D)

    # --- inducing Gram + Cholesky (linear-algebra glue, plain JAX) ----------
    # TODO(synk): Cholesky / triangular solves on the (M, M) inducing Gram
    # have no clean Pallas TPU equivalent; they stay in XLA.
    sqm = jnp.sum(xm_s * xm_s, axis=1)                               # (M,)
    d2_mm = sqm[:, None] + sqm[None, :] - 2.0 * (xm_s @ xm_s.T)
    K_mm = sf2_s * jnp.exp(-0.5 * jnp.maximum(d2_mm, 0.0))
    K_mm = K_mm + JITTER * jnp.eye(M, dtype=jnp.float32)
    Lm = jnp.linalg.cholesky(K_mm)
    eye_m = jnp.eye(M, dtype=jnp.float32)
    Linv = jax.scipy.linalg.solve_triangular(Lm, eye_m, lower=True)        # (M, M)
    w_mean = jax.scipy.linalg.cho_solve(
        (Lm, True), params["qu_mean"].astype(jnp.float32))                 # (M, 1)
    w_var = jax.scipy.linalg.cho_solve(
        (Lm, True), params["chole"].astype(jnp.float32))                   # (M, 1)

    # --- pad the inducing dimension only to sublane granularity (8) ---------
    MP = _round_up(M, 8)
    xm_p = jnp.zeros((MP, D), jnp.float32).at[:M, :].set(xm_s)
    sqm_p = jnp.zeros((MP, 1), jnp.float32).at[:M, 0].set(sqm)
    linv_p = jnp.zeros((MP, MP), jnp.float32).at[:M, :M].set(sf2_s * Linv)
    wmu_p = jnp.zeros((1, MP), jnp.float32).at[0, :M].set(sf2_s * w_mean[:, 0])
    wvar_p = jnp.zeros((1, MP), jnp.float32).at[0, :M].set(sf2_s * w_var[:, 0])

    # --- tile the test rows (lane axis); pad N up to the tile ---------------
    n128 = _round_up(max(N, 1), 128)
    # >= 2 grid steps whenever possible so the "parallel" axis shards across
    # v7x's two TensorCores; tiles stay multiples of 128 lanes and >= 128.
    half = _round_up(-(-n128 // 2), 128)
    tn = max(128, min(max_row_tile, half))
    n_pad = _round_up(N, tn)
    grid = (n_pad // tn,)

    xte_s = Xte.astype(jnp.float32) / ls
    xte_p = jnp.zeros((n_pad, D), jnp.float32).at[:N, :].set(xte_s)
    xte_t = xte_p.T                     # (D, n_pad): test rows on the lane axis

    cost = pl.CostEstimate(
        flops=2 * n_pad * MP * (D + MP + 2) + 8 * n_pad * MP,
        transcendentals=n_pad * MP,
        bytes_accessed=4 * (n_pad * D + 2 * n_pad
                            + grid[0] * (MP * (D + MP + 3) + 1)),
    )

    out = pl.pallas_call(
        _svgp_predict_body,
        out_shape=jax.ShapeDtypeStruct((2, n_pad), jnp.float32),
        grid=grid,
        in_specs=[
            pl.BlockSpec(memory_space=pltpu.MemorySpace.SMEM),  # sf2 (scalar)
            pl.BlockSpec((D, tn), lambda i: (0, i)),            # streamed test tile
            pl.BlockSpec((MP, D), lambda i: (0, 0)),            # inducing points
            pl.BlockSpec((MP, 1), lambda i: (0, 0)),            # ||xm||^2 column
            pl.BlockSpec((MP, MP), lambda i: (0, 0)),           # sf2 * Lm^{-1}
            pl.BlockSpec((1, MP), lambda i: (0, 0)),            # sf2 * Kinv@qu_mean
            pl.BlockSpec((1, MP), lambda i: (0, 0)),            # sf2 * Kinv@chole
        ],
        out_specs=pl.BlockSpec((2, tn), lambda i: (0, i)),      # [mean; var] rows
        compiler_params=pltpu.CompilerParams(
            dimension_semantics=("parallel",),
            vmem_limit_bytes=32 * 1024 * 1024),
        cost_estimate=cost,
    )(sf2, xte_t, xm_p, sqm_p, linv_p, wmu_p, wvar_p)

    mean = out[0, :N][:, None]
    yvar = out[1, :N][:, None]
    return mean, yvar


# ----------------------------------------------------------------------------
if __name__ == "__main__":
    # Full-f32 matmuls everywhere (XLA glue, references, and in-kernel dots)
    # so the Pallas kernel can be checked tightly against plain jnp.
    jax.config.update("jax_default_matmul_precision", "highest")

    num_inducing = 32
    input_dim = 8
    n_test = 300
    num_data = 256  # unused by forward, part of the module signature

    key = jax.random.PRNGKey(0)
    key_params, key_x = jax.random.split(key)
    params = init_svgp_params(key_params, num_inducing, input_dim)
    Xte = jax.random.uniform(key_x, (n_test, input_dim), jnp.float32)

    # Module-faithful forward (qu_mean initialized to zeros, as in the spec).
    mean, yvar = svgp_forward(params, Xte)
    mean = jax.block_until_ready(mean)
    yvar = jax.block_until_ready(yvar)
    assert mean.shape == (n_test, 1) and yvar.shape == (n_test, 1)

    # ---------------- correctness check against plain jnp -------------------
    # Use a nonzero qu_mean so the mean path is exercised too.
    params_chk = dict(params)
    params_chk["qu_mean"] = jax.random.normal(
        jax.random.PRNGKey(1), (num_inducing, 1), jnp.float32)
    mean_p, yvar_p = svgp_forward(params_chk, Xte)
    mean_p = jax.block_until_ready(mean_p)
    yvar_p = jax.block_until_ready(yvar_p)

    ls = jnp.exp(params["log_ls"])
    sf2 = jnp.exp(params["log_sf2"])
    xm_s = params["xm"] / ls
    xte_s = Xte / ls
    sqm = jnp.sum(xm_s * xm_s, axis=1)

    d2_mm = sqm[:, None] + sqm[None, :] - 2.0 * xm_s @ xm_s.T
    K_mm = (sf2 * jnp.exp(-0.5 * jnp.maximum(d2_mm, 0.0))
            + JITTER * jnp.eye(num_inducing, dtype=jnp.float32))
    Lm = jnp.linalg.cholesky(K_mm)
    Kinv = jax.scipy.linalg.cho_solve(
        (Lm, True), jnp.eye(num_inducing, dtype=jnp.float32))

    d2_tm = (jnp.sum(xte_s * xte_s, axis=1)[:, None]
             + sqm[None, :] - 2.0 * xte_s @ xm_s.T)
    K_tm = sf2 * jnp.exp(-0.5 * jnp.maximum(d2_tm, 0.0))
    A = K_tm @ Kinv
    mean_ref = A @ params_chk["qu_mean"]
    term1 = jnp.sum(A * K_tm, axis=1, keepdims=True)
    v = A @ params["chole"]
    yvar_ref = sf2 - term1 + v * v       # diag(K_tt) == sf2 for the ARD SE kernel

    np.testing.assert_allclose(np.asarray(mean_p), np.asarray(mean_ref),
                               rtol=5e-3, atol=5e-3)
    np.testing.assert_allclose(np.asarray(yvar_p), np.asarray(yvar_ref),
                               rtol=5e-3, atol=5e-3)

    print("KERNEL_OK")
</pallas_src>

<mosaic_0001>
module attributes {stable_mosaic.version = 11 : i64} {
  func.func @_svgp_predict_body(%arg0: i32, %arg1: memref<1xf32, #tpu.memory_space<smem>>, %arg2: memref<8x256xf32, #tpu.memory_space<vmem>>, %arg3: memref<32x8xf32, #tpu.memory_space<vmem>>, %arg4: memref<32x1xf32, #tpu.memory_space<vmem>>, %arg5: memref<32x32xf32, #tpu.memory_space<vmem>>, %arg6: memref<1x32xf32, #tpu.memory_space<vmem>>, %arg7: memref<1x32xf32, #tpu.memory_space<vmem>>, %arg8: memref<2x256xf32, #tpu.memory_space<vmem>>) attributes {dimension_semantics = [#tpu.dimension_semantics<parallel>], iteration_bounds = array<i64: 2>, scalar_prefetch = 0 : i64, scratch_operands = 0 : i64, tpu.core_type = #tpu.core_type<tc>, window_params = [{transform_indices = @transform_0, window_bounds = array<i64: 1>}, {transform_indices = @transform_1, window_bounds = array<i64: 8, 256>}, {pipeline_mode = #tpu.pipeline_mode<synchronous>, transform_indices = @transform_2, window_bounds = array<i64: 32, 8>}, {pipeline_mode = #tpu.pipeline_mode<synchronous>, transform_indices = @transform_3, window_bounds = array<i64: 32, 1>}, {pipeline_mode = #tpu.pipeline_mode<synchronous>, transform_indices = @transform_4, window_bounds = array<i64: 32, 32>}, {pipeline_mode = #tpu.pipeline_mode<synchronous>, transform_indices = @transform_5, window_bounds = array<i64: 1, 32>}, {pipeline_mode = #tpu.pipeline_mode<synchronous>, transform_indices = @transform_6, window_bounds = array<i64: 1, 32>}, {transform_indices = @transform_7, window_bounds = array<i64: 2, 256>}]} {
    %c0 = arith.constant 0 : index
    %c0_0 = arith.constant 0 : index
    %0 = vector.load %arg2[%c0, %c0_0] : memref<8x256xf32, #tpu.memory_space<vmem>>, vector<8x256xf32>
    %c0_1 = arith.constant 0 : index
    %c0_2 = arith.constant 0 : index
    %1 = vector.load %arg3[%c0_1, %c0_2] : memref<32x8xf32, #tpu.memory_space<vmem>>, vector<32x8xf32>
    %c0_3 = arith.constant 0 : index
    %c0_4 = arith.constant 0 : index
    %2 = vector.load %arg4[%c0_3, %c0_4] : memref<32x1xf32, #tpu.memory_space<vmem>>, vector<32x1xf32>
    %3 = arith.mulf %0, %0 : vector<8x256xf32>
    %cst = arith.constant dense<0.000000e+00> : vector<256xf32>
    %4 = vector.multi_reduction <add>, %3, %cst [0] : vector<8x256xf32> to vector<256xf32>
    %5 = vector.shape_cast %4 : vector<256xf32> to vector<1x256xf32>
    %cst_5 = arith.constant dense<0.000000e+00> : vector<32x256xf32>
    %6 = tpu.matmul %1, %0, %cst_5 {dimension_numbers = #tpu.dot_dimension_numbers<[1], [0], [0], [1], [0, 0, 1, 1], [], []>, precision = #tpu.contract_precision<fp32>} : vector<32x8xf32>, vector<8x256xf32>, vector<32x256xf32> -> vector<32x256xf32>
    %7 = vector.broadcast %2 : vector<32x1xf32> to vector<32x256xf32>
    %8 = vector.broadcast %5 : vector<1x256xf32> to vector<32x256xf32>
    %9 = arith.addf %7, %8 : vector<32x256xf32>
    %cst_6 = arith.constant 2.000000e+00 : f32
    %10 = vector.broadcast %cst_6 : f32 to vector<32x256xf32>
    %11 = arith.mulf %10, %6 : vector<32x256xf32>
    %12 = arith.subf %9, %11 : vector<32x256xf32>
    %cst_7 = arith.constant 0.000000e+00 : f32
    %13 = vector.broadcast %cst_7 : f32 to vector<32x256xf32>
    %14 = arith.maximumf %12, %13 : vector<32x256xf32>
    %cst_8 = arith.constant -5.000000e-01 : f32
    %15 = vector.broadcast %cst_8 : f32 to vector<32x256xf32>
    %16 = arith.mulf %15, %14 : vector<32x256xf32>
    %17 = math.exp %16 : vector<32x256xf32>
    %c0_9 = arith.constant 0 : index
    %c0_10 = arith.constant 0 : index
    %18 = vector.load %arg5[%c0_9, %c0_10] : memref<32x32xf32, #tpu.memory_space<vmem>>, vector<32x32xf32>
    %cst_11 = arith.constant dense<0.000000e+00> : vector<32x256xf32>
    %19 = tpu.matmul %18, %17, %cst_11 {dimension_numbers = #tpu.dot_dimension_numbers<[1], [0], [0], [1], [0, 0, 1, 1], [], []>, precision = #tpu.contract_precision<fp32>} : vector<32x32xf32>, vector<32x256xf32>, vector<32x256xf32> -> vector<32x256xf32>
    %c0_12 = arith.constant 0 : index
    %c0_13 = arith.constant 0 : index
    %20 = vector.load %arg6[%c0_12, %c0_13] : memref<1x32xf32, #tpu.memory_space<vmem>>, vector<1x32xf32>
    %cst_14 = arith.constant dense<0.000000e+00> : vector<1x256xf32>
    %21 = tpu.matmul %20, %17, %cst_14 {dimension_numbers = #tpu.dot_dimension_numbers<[1], [0], [0], [1], [0, 0, 1, 1], [], []>, precision = #tpu.contract_precision<fp32>} : vector<1x32xf32>, vector<32x256xf32>, vector<1x256xf32> -> vector<1x256xf32>
    %c0_15 = arith.constant 0 : index
    %c0_16 = arith.constant 0 : index
    %22 = vector.load %arg7[%c0_15, %c0_16] : memref<1x32xf32, #tpu.memory_space<vmem>>, vector<1x32xf32>
    %cst_17 = arith.constant dense<0.000000e+00> : vector<1x256xf32>
    %23 = tpu.matmul %22, %17, %cst_17 {dimension_numbers = #tpu.dot_dimension_numbers<[1], [0], [0], [1], [0, 0, 1, 1], [], []>, precision = #tpu.contract_precision<fp32>} : vector<1x32xf32>, vector<32x256xf32>, vector<1x256xf32> -> vector<1x256xf32>
    %24 = arith.mulf %19, %19 : vector<32x256xf32>
    %cst_18 = arith.constant dense<0.000000e+00> : vector<256xf32>
    %25 = vector.multi_reduction <add>, %24, %cst_18 [0] : vector<32x256xf32> to vector<256xf32>
    %26 = vector.shape_cast %25 : vector<256xf32> to vector<1x256xf32>
    %c0_19 = arith.constant 0 : index
    %27 = memref.load %arg1[%c0_19] : memref<1xf32, #tpu.memory_space<smem>>
    %28 = vector.broadcast %27 : f32 to vector<1x256xf32>
    %29 = arith.subf %28, %26 : vector<1x256xf32>
    %30 = arith.mulf %23, %23 : vector<1x256xf32>
    %31 = arith.addf %29, %30 : vector<1x256xf32>
    %c0_20 = arith.constant 0 : index
    %c0_21 = arith.constant 0 : index
    %32 = vector.load %arg8[%c0_20, %c0_21] : memref<2x256xf32, #tpu.memory_space<vmem>>, vector<1x256xf32>
    tpu.vector_store %arg8[%c0_20, %c0_21], %21 {strides = array<i32>} : memref<2x256xf32, #tpu.memory_space<vmem>>, vector<1x256xf32>,
    %c1 = arith.constant 1 : index
    %c0_22 = arith.constant 0 : index
    %33 = vector.load %arg8[%c1, %c0_22] : memref<2x256xf32, #tpu.memory_space<vmem>>, vector<1x256xf32>
    tpu.vector_store %arg8[%c1, %c0_22], %31 {strides = array<i32>} : memref<2x256xf32, #tpu.memory_space<vmem>>, vector<1x256xf32>,
    return
  }
  func.func @transform_0(%arg0: i32) -> i32 {
    %c0_i32 = arith.constant 0 : i32
    %c0_i32_0 = arith.constant 0 : i32
    return %c0_i32 : i32
  }
  func.func @transform_1(%arg0: i32) -> (i32, i32) {
    %c0_i32 = arith.constant 0 : i32
    %c0_i32_0 = arith.constant 0 : i32
    return %c0_i32, %arg0 : i32, i32
  }
  func.func @transform_2(%arg0: i32) -> (i32, i32) {
    %c0_i32 = arith.constant 0 : i32
    %c0_i32_0 = arith.constant 0 : i32
    %c0_i32_1 = arith.constant 0 : i32
    return %c0_i32, %c0_i32_0 : i32, i32
  }
  func.func @transform_3(%arg0: i32) -> (i32, i32) {
    %c0_i32 = arith.constant 0 : i32
    %c0_i32_0 = arith.constant 0 : i32
    %c0_i32_1 = arith.constant 0 : i32
    return %c0_i32, %c0_i32_0 : i32, i32
  }
  func.func @transform_4(%arg0: i32) -> (i32, i32) {
    %c0_i32 = arith.constant 0 : i32
    %c0_i32_0 = arith.constant 0 : i32
    %c0_i32_1 = arith.constant 0 : i32
    return %c0_i32, %c0_i32_0 : i32, i32
  }
  func.func @transform_5(%arg0: i32) -> (i32, i32) {
    %c0_i32 = arith.constant 0 : i32
    %c0_i32_0 = arith.constant 0 : i32
    %c0_i32_1 = arith.constant 0 : i32
    return %c0_i32, %c0_i32_0 : i32, i32
  }
  func.func @transform_6(%arg0: i32) -> (i32, i32) {
    %c0_i32 = arith.constant 0 : i32
    %c0_i32_0 = arith.constant 0 : i32
    %c0_i32_1 = arith.constant 0 : i32
    return %c0_i32, %c0_i32_0 : i32, i32
  }
  func.func @transform_7(%arg0: i32) -> (i32, i32) {
    %c0_i32 = arith.constant 0 : i32
    %c0_i32_0 = arith.constant 0 : i32
    return %c0_i32, %arg0 : i32, i32
  }
}

</mosaic_0001>

<bundles_post_ra>
// kernel: tpu_custom_call.1
= control target key start
LH: loop header
LB: loop body
LE: loop exit
PB: predicated region body
PF: predicated region fallthrough
CT: control target
= control target key end

     0   :  { %s3157_s0 = inlined_call_operand.<no memory space> [shape: f32[1], index: 0, kind: input, shape index: {}]   ;;  %s3158_s1 = inlined_call_operand.vmem [shape: f32[8,512], index: 1, kind: input, shape index: {}]   ;;  %s3159_s2 = inlined_call_operand.vmem [shape: f32[32,8], index: 2, kind: input, shape index: {}]   ;;  %s3160_s3 = inlined_call_operand.vmem [shape: f32[32,1], index: 3, kind: input, shape index: {}]   ;;  %s3161_s4 = inlined_call_operand.vmem [shape: f32[32,32], index: 4, kind: input, shape index: {}]   ;;  %s3162_s5 = inlined_call_operand.vmem [shape: f32[1,32], index: 5, kind: input, shape index: {}]   ;;  %s3163_s6 = inlined_call_operand.vmem [shape: f32[1,32], index: 6, kind: input, shape index: {}]   ;;  %s3164_s7 = inlined_call_operand.hbm [shape: f32[2,512], index: 7, kind: output, shape index: {}]  }
   0x1   :  { %12 = sst [smem:[#allocation2]] %s3157_s0 }
   0x2   :  { %13 = vsyncpa [#allocation4], 0 }
   0x3   :  { %15 = vsyncpa [#allocation4 + $0x1], 0  ;;  %s2501_s26 = smov 0   ;;  %s2503_s27 = smov 0  }
   0x4   :  { %s2505_s28 = smov 0   ;;  %s2507_s29 = smov 0  }
   0x5 LB: > { %s2522_s0 = sadd.s32 4294967295, %s2455_s29   ;;  %s2321_s30 = sadd.s32 4294967294, %s2455_s29   ;;  %s2455_s29 = sphi %s2507_s29, %s3172_s29   ;;  %s2451_s28 = sphi %s2505_s28, %s3171_s28   ;;  %s2447_s27 = sphi %s2503_s27, %s3170_s27   ;;  %s2443_s26 = sphi %s2501_s26, %s3169_s26  }
   0x6   : > { %s2526_s8 = sadd.s32 1, %s2455_s29   ;;  %s180_s9 = sadd.s32 1, %s2451_s28 }
   0x7   : > { %s177_s10 = ssub.s32 %s2455_s29, %s2526_s8  ;;  %p190_p0 = scmp.ne.s32.totalorder %s2451_s28, %s2447_s27 }
   0x8   : > { %p178_p1 = scmp.eq.s32.totalorder %s177_s10, 0  ;;  %p191_p2 = scmp.eq.s32.totalorder %s2522_s0, 1 }
   0x9   : > { %p196_p3 = scmp.ne.s32.totalorder %s2447_s27, %s2443_s26  ;;  %p197_p4 = scmp.eq.s32.totalorder %s2321_s30, 1 }
   0xa   : > { %s2537_s11 = scalar_select %p178_p1, %s2451_s28, %s180_s9  }
   0xb   : > { %p2539_p5 = por %p191_p2, %p190_p0  ;;  %p2543_p6 = por %p197_p4, %p196_p3 }
   0xc   : > { %p2324_p7 = scmp.ge.s32.totalorder %s2455_s29, 1  ;;  %p242_p8 = scmp.lt.s32.totalorder %s2455_s29, 3 }
   0xe   : > { %p243_p9 = pnand %p2324_p7, %p242_p8 }
   0xf   : > { %s2326_s14 = sshll.u32 (!%p243_p9), %s2522_s0, 1  ;;  %s271_s17 = sand.u32 (!%p243_p9), 1, %s2447_s27  }
  0x10   : > { %246 = sbr.rel (%p243_p9) target bundleno = 546 (0x222), region = 48  ;;  %p275_p10 = scmp.lt.s32.totalorder (!%p243_p9), %s2326_s14, 3 }
  0x11   : > { %s2325_s18 = sshll.u32 (!%p243_p9), %s271_s17, 2  ;;  %s2219_s20 = sld [smem:[#allocation2]] (!%p243_p9) }
  0x12   : > { %s3113_s19 = scalar_lea.vmem (!%p243_p9), [#allocation3], %s2325_s18  ;;  %s2413_s16 = scalar_lea.hbm (!%p243_p9), %s3164_s7, 8 }
  0x13   : > { %s2259_s25 = sshll.u32 (!%p243_p9), %s3113_s19, 4  ;;  %s2260_s25 = int_to_ptr.vmem [resolvable:$true] %s2259_s25 }
  0x15   : > { %v283_v0 = vld [vmem:[%s3159_s2] sm:$0xff]  ;;  %vm305_vm0 = vcmask 64512   ;;  %v284_v1 = vld [vmem:[%s3159_s2 + $0x8] sm:$0xff]  ;;  %v285_v6 = vld [vmem:[%s3159_s2 + $0x10] sm:$0xff]  ;;  %s3174_s14 = smov (!%p275_p10, %s2326_s14), 3  ;;  %v2457_v37 = vmov 0  }
  0x16   : > { %v307_v2 = vsel %vm305_vm0, %v283_v0, 0  ;;  %v310_v3 = vsel %vm305_vm0, %v284_v1, 0  ;;  %s2327_s21 = sshll.u32 %s3174_s14, 3  ;;  %v313_v9 = vsel %vm305_vm0, %v285_v6, 0  ;;  %v286_v20 = vld [vmem:[%s3159_s2 + $0x18] sm:$0xff]  ;;  %v288_v36 = vld [vmem:[%s3160_s3 + $0x8] sm:$0xff]  ;;  %2376 = vset.pattern.permute.xlu1 %v2457_v37  ;;  %2375 = vset.pattern.permute.xlu0 %v2457_v37 }
  0x17   : > { %v2558_v4 = vand.u32 4294901760, %v307_v2  ;;  %v2560_v5 = vand.u32 4294901760, %v310_v3  ;;  %s278_s24 = scalar_lea.vmem %s3158_s1, %s2327_s21  ;;  %v2588_v16 = vand.u32 4294901760, %v313_v9  ;;  %v316_v25 = vsel %vm305_vm0, %v286_v20, 0  ;;  %803 = vperm.xlu1 %2376, %v288_v36   ;;  %v287_v41 = vld [vmem:[%s3160_s3] sm:$0xff]  ;;  %v290_v43 = vld [vmem:[%s3160_s3 + $0x18] sm:$0xff] }
  0x18   : > { %v2578_v11 = vld [vmem:[%s278_s24] sm:$0xff]  ;;  %v2580_v12 = vld [vmem:[%s278_s24 + $0x8] sm:$0xff]  ;;  %v2607_v32 = vand.u32 4294901760, %v316_v25  ;;  %813 = vperm.xlu0 %2375, %v290_v43   ;;  %v289_v44 = vld [vmem:[%s3160_s3 + $0x10] sm:$0xff]  ;;  %vm876_vm1 = vcmask 261120   ;;  %vm2230_vm2 = vcmask 1040384  }
  0x19   : > { %v2566_v7 = vsub.f32 %v307_v2, %v2558_v4  ;;  %v2569_v8 = vsub.f32 %v310_v3, %v2560_v5  ;;  %v333_v13 = vand.u32 4294901760, %v2578_v11  ;;  %v572_v17 = vand.u32 4294901760, %v2580_v12  ;;  %s2334_s21 = sshll.u32 %s2522_s0, 2  ;;  %s2246_s0 = scalar_lea.sflag [#allocation4], %s271_s17 }
  0x1a   : > { %v2600_v24 = vsub.f32 %v313_v9, %v2588_v16  ;;  %v360_v35 = vsub.f32 %v316_v25, %v2607_v32  ;;  %v291_v57 = vmul.f32 %v2578_v11, %v2578_v11  ;;  %s2257_s24 = scalar_lea.hbm %s3164_s7, %s2334_s21 }
  0x1b   : > { %v2576_v10 = vand.u32 4294901760, %v2566_v7  ;;  %v2586_v15 = vand.u32 4294901760, %v2569_v8  ;;  %334 = vmatpush.msra.mxu0 %v333_v13  ;;  %v384_v19 = vsub.f32 %v2578_v11, %v333_v13  ;;  %461 = vmatpush.msra.mxu3 %v333_v13  ;;  %v623_v21 = vsub.f32 %v2580_v12, %v572_v17  ;;  %s2261_s30 = sshll.u32 %s2257_s24, 4  ;;  %s2262_s30 = int_to_ptr.hbm [resolvable:$true] %s2261_s30 }
  0x1c   : > { %v2605_v31 = vand.u32 4294901760, %v2600_v24  ;;  %v361_v39 = vand.u32 4294901760, %v360_v35  ;;  %v293_v59 = vrot.slane %v291_v57, 4  ;;  %s2407_s9 = sshra.s32 %s2262_s30, 4  ;;  %s2408_s9 = int_to_ptr.hbm [resolvable:$true] %s2407_s9 }
  0x1d   : > { %v338_v14 = vsub.f32 %v2566_v7, %v2576_v10  ;;  %465 = vmatmul.f32.vlgmr.msra.gmra.mxu3 %v2576_v10  ;;  %423 = vmatpush.msra.mxu2 %v384_v19  ;;  %v385_v22 = vand.u32 4294901760, %v384_v19  ;;  %v346_v23 = vsub.f32 %v2569_v8, %v2586_v15  ;;  %v624_v26 = vand.u32 4294901760, %v623_v21  ;;  %s2409_s10 = scalar_lea.hbm %s2408_s9, 4  ;;  %p2414_p0 = scmp.lt.s32.totalorder %s2408_s9, %s3164_s7 }
  0x1e   : > { %426 = vmatmul.f32.vlgmr.msra.gmra.mxu2 %v2566_v7  ;;  %v354_v34 = vsub.f32 %v2600_v24, %v2605_v31  ;;  %v362_v40 = vsub.f32 %v360_v35, %v361_v39  ;;  %v294_v0 = vadd.f32 %v293_v59, %v291_v57  ;;  %p2410_p11 = scmp.ne.s32.totalorder %s2408_s9, %s2409_s10  ;;  %p2415_p1 = scmp.lt.s32.totalorder %s2413_s16, %s2409_s10 }
  0x1f   : > { %v339_v18 = vand.u32 4294901760, %v338_v14  ;;  %v386_v27 = vsub.f32 %v384_v19, %v385_v22  ;;  %573 = vmatpush.msrb.mxu2 %v572_v17  ;;  %505 = vmatpush.msrb.mxu0 %v385_v22  ;;  %v625_v28 = vsub.f32 %v623_v21, %v624_v26  ;;  %v347_v30 = vand.u32 4294901760, %v346_v23 }
  0x20   : > { %v355_v38 = vand.u32 4294901760, %v354_v34  ;;  %798 = vperm.xlu1 %2376, %v287_v41   ;;  %v363_v42 = vand.u32 4294901760, %v362_v40  ;;  %808 = vperm.xlu0 %2375, %v289_v44   ;;  %v295_v3 = vrot.slane %v294_v0, 2  ;;  %p2411_p12 = pnand %p2410_p11, %p2539_p5  ;;  %p2416_p2 = por %p2415_p1, %p2414_p0 }
  0x21   : > { %340 = vmatmul.f32.vlgmr.msra.gmra.mxu0 %v339_v18  ;;  %744 = vmatpush.msra.mxu2 %v624_v26  ;;  %v387_v29 = vand.u32 4294901760, %v386_v27  ;;  %v626_v33 = vand.u32 4294901760, %v625_v28 }
  0x22   : > { %662 = vmatpush.msra.mxu0 %v623_v21  ;;  %p2412_p13 = pneg %p2411_p12 }
  0x23   : > { %388 = vmatpush.msra.mxu1 %v387_v29  ;;  %627 = vmatpush.msrb.mxu3 %v626_v33 }
  0x24   : > { %390 = vmatmul.f32.vlgmr.msra.gmra.mxu1 %v2558_v4  ;;  %p2417_p3 = pnand %p2416_p2, %p2412_p13 }
  0x25   : > { %471 = vmatmul.f32.gmra.mxu3 %v2586_v15  ;;  %539 = vmatpush.msrb.mxu1 %v333_v13 }
  0x26   : > { %431 = vmatmul.f32.gmra.mxu2 %v2569_v8  ;;  %778 = vmatpush.msra.mxu3 %v572_v17 }
  0x27   : > { %700 = vmatpush.msra.mxu1 %v572_v17 }
  0x29   : > { %348 = vmatmul.f32.gmra.mxu0 %v347_v30 }
  0x2c   : > { %394 = vmatmul.f32.gmra.mxu1 %v2560_v5 }
  0x2d   : > { %477 = vmatmul.f32.gmra.mxu3 %v2605_v31 }
  0x2e   : > { %436 = vmatmul.f32.gmra.mxu2 %v2600_v24 }
  0x31   : > { %356 = vmatmul.f32.gmra.mxu0 %v355_v38 }
  0x34   : > { %398 = vmatmul.f32.gmra.mxu1 %v2588_v16 }
  0x35   : > { %483 = vmatmul.f32.gmra.mxu3 %v361_v39 }
  0x36   : > { %441 = vmatmul.f32.gmra.mxu2 %v360_v35 }
  0x39   : > { %364 = vmatmul.f32.gmra.mxu0 %v363_v42 }
  0x3c   : > { %402 = vmatmul.f32.gmra.mxu1 %v2607_v32 }
  0x3d   : > { %629 = vmatmul.f32.vlgmr.msrb.gmra.mxu3 %v2558_v4 }
  0x3e   : > { %579 = vmatmul.f32.vlgmr.msrb.gmra.mxu2 %v339_v18 }
  0x41   : > { %507 = vmatmul.f32.vlgmr.msrb.gmra.mxu0 %v2558_v4 }
  0x44   : > { %541 = vmatmul.f32.vlgmr.msrb.gmra.mxu1 %v2558_v4 }
  0x45   : > { %633 = vmatmul.f32.gmra.mxu3 %v2560_v5 }
  0x46   : > { %587 = vmatmul.f32.gmra.mxu2 %v347_v30 }
  0x49   : > { %511 = vmatmul.f32.gmra.mxu0 %v2560_v5 }
  0x4c   : > { %545 = vmatmul.f32.gmra.mxu1 %v2560_v5 }
  0x4d   : > { %637 = vmatmul.f32.gmra.mxu3 %v2588_v16 }
  0x4e   : > { %595 = vmatmul.f32.gmra.mxu2 %v355_v38 }
  0x51   : > { %515 = vmatmul.f32.gmra.mxu0 %v2588_v16 }
  0x54   : > { %549 = vmatmul.f32.gmra.mxu1 %v2588_v16 }
  0x55   : > { %641 = vmatmul.f32.gmra.mxu3 %v2607_v32 }
  0x56   : > { %603 = vmatmul.f32.gmra.mxu2 %v363_v42 }
  0x59   : > { %519 = vmatmul.f32.gmra.mxu0 %v2607_v32 }
  0x5c   : > { %553 = vmatmul.f32.gmra.mxu1 %v2607_v32 }
  0x5d   : > { %780 = vmatmul.f32.vlgmr.msra.gmra.mxu3 %v2558_v4 }
  0x5e   : > { %746 = vmatmul.f32.vlgmr.msra.gmra.mxu2 %v2558_v4 }
  0x61   : > { %665 = vmatmul.f32.vlgmr.msra.gmra.mxu0 %v2566_v7 }
  0x64   : > { %704 = vmatmul.f32.vlgmr.msra.gmra.mxu1 %v2576_v10  ;;  %v296_v10 = vadd.f32 %v295_v3, %v294_v0 }
  0x65   : > { %784 = vmatmul.f32.gmra.mxu3 %v2560_v5 }
  0x66   : > { %750 = vmatmul.f32.gmra.mxu2 %v2560_v5  ;;  %v297_v17 = vrot.slane %v296_v10, 1 }
  0x69   : > { %670 = vmatmul.f32.gmra.mxu0 %v2569_v8 }
  0x6c   : > { %710 = vmatmul.f32.gmra.mxu1 %v2586_v15 }
  0x6d   : > { %788 = vmatmul.f32.gmra.mxu3 %v2588_v16 }
  0x6e   : > { %754 = vmatmul.f32.gmra.mxu2 %v2588_v16 }
  0x71   : > { %675 = vmatmul.f32.gmra.mxu0 %v2600_v24  ;;  %v298_v24 = vadd.f32 %v297_v17, %v296_v10 }
  0x74   : > { %716 = vmatmul.f32.gmra.mxu1 %v2605_v31 }
  0x75   : > { %792 = vmatmul.f32.gmra.mxu3 %v2607_v32 }
  0x76   : > { %758 = vmatmul.f32.gmra.mxu2 %v2607_v32 }
  0x79   : > { %680 = vmatmul.f32.gmra.mxu0 %v360_v35 }
  0x7c   : > { %722 = vmatmul.f32.gmra.mxu1 %v361_v39 }
  0x89   : > { %v2662_v5 = vpop.permute.xlu1 %803 }
  0x8a   : > { %v2666_v13 = vpop.permute.xlu0 %813  ;;  %v818_v29 = vadd.f32 %v2662_v5, %v298_v24 }
  0x8b   : > { %v822_v59 = vadd.f32 %v2666_v13, %v298_v24 }
  0x92   : > { %v2672_v28 = vpop.permute.xlu1 %798  ;;  %v2676_v35 = vpop.permute.xlu0 %808 }
  0x93   : > { %v816_v34 = vadd.f32 %v2672_v28, %v298_v24 }
  0x9e   : > { %v341_v45 = vpop.f32.mrf.mxu0 }
  0xa0   : > { %v466_v46 = vpop.f32.mrf.mxu3 }
  0xa1   : > { %v391_v47 = vpop.f32.mrf.mxu1  ;;  %v427_v48 = vpop.f32.mrf.mxu2 }
  0xa2   : > { %v392_v1 = vadd.f32 %v391_v47, %v341_v45  ;;  %v820_v45 = vadd.f32 %v2676_v35, %v298_v24 }
  0xa4   : > { %v428_v8 = vadd.f32 %v427_v48, %v392_v1 }
  0xa6   : > { %v349_v49 = vpop.f32.mrf.mxu0  ;;  %v467_v14 = vadd.f32 %v466_v46, %v428_v8 }
  0xa8   : > { %v472_v50 = vpop.f32.mrf.mxu3 }
  0xa9   : > { %v395_v51 = vpop.f32.mrf.mxu1  ;;  %v432_v52 = vpop.f32.mrf.mxu2 }
  0xaa   : > { %v396_v2 = vadd.f32 %v395_v51, %v349_v49 }
  0xac   : > { %v433_v9 = vadd.f32 %v432_v52, %v396_v2 }
  0xae   : > { %v357_v53 = vpop.f32.mrf.mxu0  ;;  %v473_v15 = vadd.f32 %v472_v50, %v433_v9 }
  0xb0   : > { %v478_v54 = vpop.f32.mrf.mxu3 }
  0xb1   : > { %v399_v55 = vpop.f32.mrf.mxu1  ;;  %v437_v56 = vpop.f32.mrf.mxu2 }
  0xb2   : > { %v400_v16 = vadd.f32 %v399_v55, %v357_v53  ;;  %v292_v55 = vmul.f32 %v2580_v12, %v2580_v12 }
  0xb4   : > { %v438_v23 = vadd.f32 %v437_v56, %v400_v16  ;;  %v299_v3 = vrot.slane %v292_v55, 4 }
  0xb6   : > { %v365_v58 = vpop.f32.mrf.mxu0  ;;  %v479_v31 = vadd.f32 %v478_v54, %v438_v23 }
  0xb8   : > { %v484_v60 = vpop.f32.mrf.mxu3 }
  0xb9   : > { %v403_v61 = vpop.f32.mrf.mxu1  ;;  %v442_v62 = vpop.f32.mrf.mxu2 }
  0xba   : > { %v404_v32 = vadd.f32 %v403_v61, %v365_v58 }
  0xbc   : > { %v443_v41 = vadd.f32 %v442_v62, %v404_v32 }
  0xbe   : > { %v508_v63 = vpop.f32.mrf.mxu0  ;;  %v485_v48 = vadd.f32 %v484_v60, %v443_v41  ;;  %v872_v60 = vld [vmem:[%s3161_s4] sm:$0xff] }
  0xbf   : > { %v509_v19 = vadd.f32 %v508_v63, %v467_v14  ;;  %v878_v9 = vsel %vm876_vm1, %v872_v60, 0 }
  0xc0   : > { %v2660_v4 = vpop.f32.mrf.mxu3 }
  0xc1   : > { %v542_v6 = vpop.f32.mrf.mxu1  ;;  %v2664_v7 = vpop.f32.mrf.mxu2 }
  0xc2   : > { %v543_v25 = vadd.f32 %v542_v6, %v509_v19  ;;  %v2694_v19 = vand.u32 4294901760, %v878_v9  ;;  %v631_v23 = vadd.f32 %v2660_v4, %v2664_v7 }
  0xc4   : > { %v824_v33 = vmul.f32 2.0, %v543_v25 }
  0xc6   : > { %v512_v11 = vpop.f32.mrf.mxu0  ;;  %v832_v42 = vsub.f32 %v816_v34, %v824_v33 }
  0xc7   : > { %v513_v20 = vadd.f32 %v512_v11, %v473_v15  ;;  %v300_v11 = vadd.f32 %v299_v3, %v292_v55 }
  0xc8   : > { %v2668_v18 = vpop.f32.mrf.mxu3  ;;  %v840_v49 = vmax.f32 %v832_v42, 0.0 }
  0xc9   : > { %v546_v21 = vpop.f32.mrf.mxu1  ;;  %v2670_v22 = vpop.f32.mrf.mxu2  ;;  %v301_v25 = vrot.slane %v300_v11, 2 }
  0xca   : > { %v547_v26 = vadd.f32 %v546_v21, %v513_v20  ;;  %v848_v58 = vmul.f32 -0.5, %v840_v49  ;;  %v873_v20 = vld [vmem:[%s3161_s4 + $0x8] sm:$0xff] }
  0xcb   : > { %v302_v4 = vadd.f32 %v301_v25, %v300_v11 }
  0xcc   : > { %v826_v30 = vmul.f32 2.0, %v547_v26  ;;  %v856_v6 = vmul.f32 1.442695, %v848_v58  ;;  %v635_v26 = vadd.f32 %v2668_v18, %v2670_v22 }
  0xce   : > { %v516_v27 = vpop.f32.mrf.mxu0  ;;  %v834_v37 = vsub.f32 %v818_v29, %v826_v30  ;;  %v2704_v30 = vsub.f32 %v878_v9, %v2694_v19 }
  0xcf   : > { %v517_v38 = vadd.f32 %v516_v27, %v479_v31  ;;  %v881_v31 = vsel %vm876_vm1, %v873_v20, 0 }
  0xd0   : > { %v2678_v36 = vpop.f32.mrf.mxu3  ;;  %v842_v46 = vmax.f32 %v834_v37, 0.0  ;;  %v2711_v18 = vand.u32 4294901760, %v881_v31  ;;  %v2714_v42 = vand.u32 4294901760, %v2704_v30 }
  0xd1   : > { %v550_v39 = vpop.f32.mrf.mxu1  ;;  %v2680_v40 = vpop.f32.mrf.mxu2 }
  0xd2   : > { %v551_v43 = vadd.f32 %v550_v39, %v517_v38  ;;  %v850_v52 = vmul.f32 -0.5, %v842_v46  ;;  %v874_v46 = vld [vmem:[%s3161_s4 + $0x10] sm:$0xff]  ;;  %v639_v55 = vadd.f32 %v2678_v36, %v2680_v40  ;;  %v912_v58 = vsub.f32 %v2704_v30, %v2714_v42 }
  0xd4   : > { %v828_v47 = vmul.f32 2.0, %v551_v43  ;;  %v860_v0 = vmul.f32 1.442695, %v850_v52  ;;  %v2764_v11 = vand.u32 4294901760, %v912_v58 }
  0xd6   : > { %v520_v44 = vpop.f32.mrf.mxu0  ;;  %v836_v50 = vsub.f32 %v820_v45, %v828_v47 }
  0xd7   : > { %v521_v53 = vadd.f32 %v520_v44, %v485_v48 }
  0xd8   : > { %v2683_v51 = vpop.f32.mrf.mxu3  ;;  %v844_v54 = vmax.f32 %v836_v50, 0.0  ;;  %v303_v50 = vrot.slane %v302_v4, 1 }
  0xd9   : > { %v554_v56 = vpop.f32.mrf.mxu1  ;;  %v2687_v57 = vpop.f32.mrf.mxu2 }
  0xda   : > { %v852_v61 = vmul.f32 -0.5, %v844_v54  ;;  %v555_v62 = vadd.f32 %v554_v56, %v521_v53  ;;  %v2730_v54 = vsub.f32 %v881_v31, %v2711_v18 }
  0xdc   : > { %v864_v1 = vmul.f32 1.442695, %v852_v61  ;;  %v830_v2 = vmul.f32 2.0, %v555_v62 }
  0xde   : > { %v666_v63 = vpop.f32.mrf.mxu0  ;;  %2377 = vpow2.f32 %v864_v1  ;;  %v838_v12 = vsub.f32 %v822_v59, %v830_v2  ;;  %v884_v59 = vsel %vm876_vm1, %v874_v46, 0 }
  0xdf   : > { %2379 = vpow2.f32 %v860_v0  ;;  %v667_v29 = vadd.f32 %v666_v63, %v631_v23 }
  0xe0   : > { %v781_v8 = vpop.f32.mrf.mxu3  ;;  %v846_v10 = vmax.f32 %v838_v12, 0.0  ;;  %2381 = vpow2.f32 %v856_v6  ;;  %v2757_v6 = vand.u32 4294901760, %v2730_v54  ;;  %v2759_v12 = vand.u32 4294901760, %v884_v59 }
  0xe1   : > { %v705_v14 = vpop.f32.mrf.mxu1  ;;  %v747_v15 = vpop.f32.mrf.mxu2 }
  0xe2   : > { %v854_v16 = vmul.f32 -0.5, %v846_v10  ;;  %v706_v37 = vadd.f32 %v705_v14, %v667_v29  ;;  %v643_v29 = vadd.f32 %v2683_v51, %v2687_v57 }
  0xe4   : > { %v2378_v21 = vpop.eup %2377  ;;  %v868_v24 = vmul.f32 1.442695, %v854_v16  ;;  %v748_v48 = vadd.f32 %v747_v15, %v706_v37 }
  0xe5   : > { %v2380_v27 = vpop.eup %2379  ;;  %v2707_v32 = vand.u32 4294901760, %v2378_v21 }
  0xe6   : > { %v671_v17 = vpop.f32.mrf.mxu0  ;;  %2383 = vpow2.f32 %v868_v24  ;;  %v2382_v34 = vpop.eup %2381  ;;  %v2709_v7 = vand.u32 4294901760, %v2380_v27  ;;  %v782_v36 = vadd.f32 %v781_v8, %v748_v48  ;;  %v2761_v8 = vadd.f32 %v303_v50, %v302_v4  ;;  %v875_v24 = vld [vmem:[%s3161_s4 + $0x18] sm:$0xff] }
  0xe7   : > { %v672_v38 = vadd.f32 %v671_v17, %v635_v26  ;;  %v2716_v43 = vand.u32 4294901760, %v2382_v34  ;;  %v2719_v44 = vsub.f32 %v2378_v21, %v2707_v32 }
  0xe8   : > { %v785_v33 = vpop.f32.mrf.mxu3  ;;  %v2727_v53 = vsub.f32 %v2380_v27, %v2709_v7  ;;  %v819_v17 = vadd.f32 %v2662_v5, %v2761_v8  ;;  %v817_v20 = vadd.f32 %v2672_v28, %v2761_v8  ;;  %v825_v21 = vmul.f32 2.0, %v782_v36 }
  0xe9   : > { %v711_v39 = vpop.f32.mrf.mxu1  ;;  %v751_v41 = vpop.f32.mrf.mxu2  ;;  %v2738_v61 = vsub.f32 %v2382_v34, %v2716_v43  ;;  %v2746_v63 = vand.u32 4294901760, %v2719_v44  ;;  %v920_v28 = vsub.f32 %v2730_v54, %v2757_v6  ;;  %v2792_v27 = vsub.f32 %v884_v59, %v2759_v12 }
  0xea   : > { %v712_v22 = vadd.f32 %v711_v39, %v672_v38  ;;  %v2754_v3 = vand.u32 4294901760, %v2727_v53  ;;  %v887_v38 = vsel %vm876_vm1, %v875_v24, 0  ;;  %v821_v51 = vadd.f32 %v2676_v35, %v2761_v8 }
  0xeb   : > { %v963_v15 = vsub.f32 %v2719_v44, %v2746_v63  ;;  %v2773_v16 = vand.u32 4294901760, %v2738_v61  ;;  %v833_v57 = vsub.f32 %v817_v20, %v825_v21  ;;  %v2813_v46 = vand.u32 4294901760, %v920_v28 }
  0xec   : > { %v2384_v47 = vpop.eup %2383  ;;  %v752_v49 = vadd.f32 %v751_v41, %v712_v22  ;;  %v969_v5 = vsub.f32 %v2727_v53, %v2754_v3  ;;  %v2819_v50 = vand.u32 4294901760, %v887_v38 }
  0xed   : > { %v2724_v52 = vand.u32 4294901760, %v2384_v47  ;;  %v2800_v34 = vand.u32 4294901760, %v963_v15  ;;  %v975_v37 = vsub.f32 %v2738_v61, %v2773_v16  ;;  %v841_v58 = vmax.f32 %v833_v57, 0.0 }
  0xee   : > { %v676_v45 = vpop.f32.mrf.mxu0  ;;  %v786_v56 = vadd.f32 %v785_v33, %v752_v49 }
  0xef   : > { %902 = vmatpush.msrb.mxu0 %v2724_v52  ;;  %1053 = vmatpush.msrb.mxu3 %v2724_v52  ;;  %v2743_v62 = vsub.f32 %v2384_v47, %v2724_v52  ;;  %v677_v40 = vadd.f32 %v676_v45, %v639_v55  ;;  %v2811_v45 = vand.u32 4294901760, %v969_v5  ;;  %v2816_v47 = vand.u32 4294901760, %v2792_v27 }
  0xf0   : > { %v789_v60 = vpop.f32.mrf.mxu3  ;;  %v827_v9 = vmul.f32 2.0, %v786_v56  ;;  %v2823_v56 = vand.u32 4294901760, %v975_v37 }
  0xf1   : > { %v717_v0 = vpop.f32.mrf.mxu1  ;;  %904 = vmatpush.msrb.mxu0 %v2707_v32  ;;  %1009 = vmatpush.msrb.mxu2 %v2743_v62  ;;  %v755_v1 = vpop.f32.mrf.mxu2  ;;  %v2751_v2 = vand.u32 4294901760, %v2743_v62 }
  0xf2   : > { %v718_v10 = vadd.f32 %v717_v0, %v677_v40  ;;  %1055 = vmatpush.msrb.mxu3 %v2707_v32  ;;  %v835_v31 = vsub.f32 %v819_v17, %v827_v9  ;;  %v928_v40 = vsub.f32 %v2792_v27, %v2816_v47  ;;  %v2832_v9 = vsub.f32 %v887_v38, %v2819_v50 }
  0xf3   : > { %906 = vmatpush.msrb.mxu0 %v2709_v7  ;;  %1012 = vmatpush.msrb.mxu2 %v2719_v44  ;;  %v957_v14 = vsub.f32 %v2743_v62, %v2751_v2 }
  0xf4   : > { %v756_v23 = vadd.f32 %v755_v1, %v718_v10  ;;  %1057 = vmatpush.msrb.mxu3 %v2709_v7  ;;  %v843_v35 = vmax.f32 %v835_v31, 0.0  ;;  %v823_v10 = vadd.f32 %v2666_v13, %v2761_v8  ;;  %v2839_v20 = vand.u32 4294901760, %v928_v40 }
  0xf5   : > { %908 = vmatpush.msrb.mxu0 %v2716_v43  ;;  %1015 = vmatpush.msrb.mxu2 %v2727_v53  ;;  %v2785_v26 = vand.u32 4294901760, %v957_v14  ;;  %v849_v14 = vmul.f32 -0.5, %v841_v58  ;;  %v2843_v24 = vand.u32 4294901760, %v2832_v9 }
  0xf6   : > { %v681_v25 = vpop.f32.mrf.mxu0  ;;  %v790_v33 = vadd.f32 %v789_v60, %v756_v23  ;;  %1059 = vmatpush.msrb.mxu3 %v2716_v43  ;;  %914 = vmatmul.f32.vlgmr.msrb.gmra.mxu0 %v2764_v11  ;;  %v851_v60 = vmul.f32 -0.5, %v843_v35 }
  0xf7   : > { %1100 = vmatpush.msra.mxu0 %v2751_v2  ;;  %959 = vmatpush.msrb.mxu1 %v2785_v26  ;;  %v682_v4 = vadd.f32 %v681_v25, %v643_v29  ;;  %v858_v13 = vmul.f32 1.442695, %v849_v14  ;;  %v936_v5 = vsub.f32 %v2832_v9, %v2843_v24 }
  0xf8   : > { %v829_v39 = vmul.f32 2.0, %v790_v33  ;;  %1018 = vmatpush.msrb.mxu2 %v2738_v61  ;;  %1063 = vmatmul.f32.vlgmr.msrb.gmra.mxu3 %v2714_v42  ;;  %v793_v55 = vpop.f32.mrf.mxu3  ;;  %v862_v21 = vmul.f32 1.442695, %v851_v60 }
  0xf9   : > { %1104 = vmatpush.msra.mxu0 %v2746_v63  ;;  %v723_v41 = vpop.f32.mrf.mxu1  ;;  %965 = vmatpush.msrb.mxu1 %v2800_v34  ;;  %v759_v22 = vpop.f32.mrf.mxu2  ;;  %v2853_v31 = vand.u32 4294901760, %v936_v5 }
  0xfa   : > { %v837_v48 = vsub.f32 %v821_v51, %v829_v39  ;;  %v724_v49 = vadd.f32 %v723_v41, %v682_v4  ;;  %1021 = vmatmul.f32.vlgmr.msrb.gmra.mxu2 %v2704_v30 }
  0xfb   : > { %1108 = vmatpush.msra.mxu0 %v2754_v3  ;;  %971 = vmatpush.msrb.mxu1 %v2811_v45 }
  0xfc   : > { %v845_v59 = vmax.f32 %v837_v48, 0.0  ;;  %v760_v36 = vadd.f32 %v759_v22, %v724_v49 }
  0xfd   : > { %1112 = vmatpush.msra.mxu0 %v2773_v16  ;;  %977 = vmatpush.msrb.mxu1 %v2823_v56 }
  0xfe   : > { %v853_v0 = vmul.f32 -0.5, %v845_v59  ;;  %v794_v1 = vadd.f32 %v793_v55, %v760_v36  ;;  %922 = vmatmul.f32.gmra.mxu0 %v2813_v46  ;;  %979 = vmatmul.f32.vlgmr.msrb.gmra.mxu1 %v2694_v19 }
  0xff   : > { %1143 = vmatpush.msra.mxu1 %v2724_v52 }
 0x100   : > { %v866_v15 = vmul.f32 1.442695, %v853_v0  ;;  %v831_v17 = vmul.f32 2.0, %v794_v1  ;;  %1069 = vmatmul.f32.gmra.mxu3 %v2757_v6 }
 0x101   : > { %1145 = vmatpush.msra.mxu1 %v2707_v32 }
 0x102   : > { %2385 = vpow2.f32 %v866_v15  ;;  %v839_v23 = vsub.f32 %v823_v10, %v831_v17  ;;  %1026 = vmatmul.f32.gmra.mxu2 %v2730_v54 }
 0x103   : > { %1147 = vmatpush.msra.mxu1 %v2709_v7  ;;  %2387 = vpow2.f32 %v862_v21 }
 0x104   : > { %v847_v8 = vmax.f32 %v839_v23, 0.0  ;;  %2389 = vpow2.f32 %v858_v13 }
 0x105   : > { %1149 = vmatpush.msra.mxu1 %v2716_v43 }
 0x106   : > { %v855_v25 = vmul.f32 -0.5, %v847_v8  ;;  %930 = vmatmul.f32.gmra.mxu0 %v2839_v20  ;;  %983 = vmatmul.f32.gmra.mxu1 %v2711_v18 }
 0x108   : > { %v2386_v28 = vpop.eup %2385  ;;  %v870_v29 = vmul.f32 1.442695, %v855_v25  ;;  %1075 = vmatmul.f32.gmra.mxu3 %v2816_v47 }
 0x109   : > { %v2855_v33 = vand.u32 4294901760, %v2386_v28  ;;  %v2388_v37 = vpop.eup %2387 }
 0x10a   : > { %2391 = vpow2.f32 %v870_v29  ;;  %1031 = vmatmul.f32.gmra.mxu2 %v2792_v27  ;;  %v2390_v38 = vpop.eup %2389  ;;  %v2859_v51 = vand.u32 4294901760, %v2388_v37 }
 0x10b   : > { %v2862_v57 = vsub.f32 %v2386_v28, %v2855_v33  ;;  %v2865_v39 = vand.u32 4294901760, %v2390_v38 }
 0x10c   : > { %v2876_v35 = vsub.f32 %v2388_v37, %v2859_v51 }
 0x10d   : > { %v2879_v48 = vand.u32 4294901760, %v2862_v57  ;;  %v2887_v55 = vsub.f32 %v2390_v38, %v2865_v39 }
 0x10e   : > { %938 = vmatmul.f32.gmra.mxu0 %v2853_v31  ;;  %987 = vmatmul.f32.gmra.mxu1 %v2759_v12  ;;  %v2898_v36 = vand.u32 4294901760, %v2876_v35 }
 0x10f   : > { %v1241_v59 = vsub.f32 %v2862_v57, %v2879_v48  ;;  %v2906_v60 = vand.u32 4294901760, %v2887_v55 }
 0x110   : > { %v2392_v4 = vpop.eup %2391  ;;  %1081 = vmatmul.f32.gmra.mxu3 %v2843_v24  ;;  %v1247_v1 = vsub.f32 %v2876_v35, %v2898_v36 }
 0x111   : > { %v2867_v41 = vand.u32 4294901760, %v2392_v4  ;;  %v2912_v0 = vand.u32 4294901760, %v1241_v59  ;;  %v1253_v10 = vsub.f32 %v2887_v55, %v2906_v60 }
 0x112   : > { %1036 = vmatmul.f32.gmra.mxu2 %v2832_v9 }
 0x113   : > { %1180 = vmatpush.msra.mxu2 %v2867_v41  ;;  %1331 = vmatpush.msrb.mxu1 %v2867_v41  ;;  %v2873_v22 = vsub.f32 %v2392_v4, %v2867_v41  ;;  %v2932_v14 = vand.u32 4294901760, %v1253_v10 }
 0x115   : > { %1182 = vmatpush.msra.mxu2 %v2855_v33  ;;  %1287 = vmatpush.msrb.mxu0 %v2873_v22  ;;  %v2884_v49 = vand.u32 4294901760, %v2873_v22 }
 0x116   : > { %1333 = vmatpush.msrb.mxu1 %v2855_v33  ;;  %1114 = vmatmul.f32.vlgmr.msra.gmra.mxu0 %v2694_v19 }
 0x117   : > { %991 = vmatmul.f32.gmra.mxu1 %v2819_v50  ;;  %1184 = vmatpush.msra.mxu2 %v2859_v51  ;;  %v1235_v58 = vsub.f32 %v2873_v22, %v2884_v49 }
 0x118   : > { %1290 = vmatpush.msrb.mxu0 %v2862_v57  ;;  %1335 = vmatpush.msrb.mxu1 %v2859_v51 }
 0x119   : > { %1186 = vmatpush.msra.mxu2 %v2865_v39  ;;  %v2903_v40 = vand.u32 4294901760, %v1235_v58 }
 0x11a   : > { %1293 = vmatpush.msrb.mxu0 %v2876_v35  ;;  %1337 = vmatpush.msrb.mxu1 %v2865_v39 }
 0x11b   : > { %1192 = vmatmul.f32.vlgmr.msra.gmra.mxu2 %v2764_v11  ;;  %1237 = vmatpush.msra.mxu3 %v2903_v40  ;;  %v2926_v11 = vand.u32 4294901760, %v1247_v1 }
 0x11c   : > { %1378 = vmatpush.msrb.mxu2 %v2884_v49  ;;  %1296 = vmatpush.msrb.mxu0 %v2887_v55 }
 0x11d   : > { %1243 = vmatpush.msra.mxu3 %v2912_v0 }
 0x11e   : > { %1462 = vmatpush.msra.mxu0 %v2724_v52  ;;  %1382 = vmatpush.msrb.mxu2 %v2879_v48 }
 0x11f   : > { %1118 = vmatmul.f32.gmra.mxu0 %v2711_v18  ;;  %1151 = vmatmul.f32.vlgmr.msra.gmra.mxu1 %v2694_v19 }
 0x120   : > { %1464 = vmatpush.msra.mxu0 %v2707_v32  ;;  %1386 = vmatpush.msrb.mxu2 %v2898_v36 }
 0x121   : > { %1495 = vmatpush.msra.mxu1 %v2785_v26  ;;  %1249 = vmatpush.msra.mxu3 %v2926_v11 }
 0x122   : > { %1466 = vmatpush.msra.mxu0 %v2709_v7  ;;  %1390 = vmatpush.msrb.mxu2 %v2906_v60 }
 0x123   : > { %1501 = vmatpush.msra.mxu1 %v2800_v34  ;;  %1255 = vmatpush.msra.mxu3 %v2932_v14 }
 0x124   : > { %1533 = vmatpush.msra.mxu2 %v2743_v62  ;;  %1257 = vmatmul.f32.vlgmr.msra.gmra.mxu3 %v2694_v19 }
 0x125   : > { %1200 = vmatmul.f32.gmra.mxu2 %v2813_v46  ;;  %1421 = vmatpush.msrb.mxu3 %v2867_v41  ;;  %v1445_v46 = vld [vmem:[%s3162_s5] sm:$0x1] }
 0x126   : > { %1468 = vmatpush.msra.mxu0 %v2716_v43  ;;  %1507 = vmatpush.msra.mxu1 %v2811_v45 }
 0x127   : > { %1536 = vmatpush.msra.mxu2 %v2719_v44  ;;  %1423 = vmatpush.msrb.mxu3 %v2855_v33 }
 0x128   : > { %1122 = vmatmul.f32.gmra.mxu0 %v2759_v12  ;;  %1513 = vmatpush.msra.mxu1 %v2823_v56 }
 0x129   : > { %1539 = vmatpush.msra.mxu2 %v2727_v53  ;;  %1155 = vmatmul.f32.gmra.mxu1 %v2711_v18 }
 0x12a   : > { %1425 = vmatpush.msrb.mxu3 %v2859_v51 }
 0x12b   : > { %1542 = vmatpush.msra.mxu2 %v2738_v61 }
 0x12c   : > { %1427 = vmatpush.msrb.mxu3 %v2865_v39 }
 0x12d   : > { %1208 = vmatmul.f32.gmra.mxu2 %v2839_v20  ;;  %1261 = vmatmul.f32.gmra.mxu3 %v2711_v18 }
 0x12e   : > { %1562 = vmatpush.msra.mxu3 %v2724_v52 }
 0x130   : > { %1564 = vmatpush.msra.mxu3 %v2707_v32  ;;  %1126 = vmatmul.f32.gmra.mxu0 %v2819_v50 }
 0x131   : > { %1159 = vmatmul.f32.gmra.mxu1 %v2759_v12 }
 0x132   : > { %1566 = vmatpush.msra.mxu3 %v2709_v7 }
 0x134   : > { %1568 = vmatpush.msra.mxu3 %v2716_v43 }
 0x135   : > { %1216 = vmatmul.f32.gmra.mxu2 %v2853_v31  ;;  %1265 = vmatmul.f32.gmra.mxu3 %v2759_v12 }
 0x138   : > { %1299 = vmatmul.f32.vlgmr.msrb.gmra.mxu0 %v2704_v30  ;;  %v1447_v30 = vsel %vm876_vm1, %v1445_v46, 0 }
 0x139   : > { %1591 = vmatpush.msrb.mxu0 %v2751_v2  ;;  %1163 = vmatmul.f32.gmra.mxu1 %v2819_v50  ;;  %v2981_v15 = vand.u32 4294901760, %v1447_v30 }
 0x13b   : > { %1595 = vmatpush.msrb.mxu0 %v2746_v63 }
 0x13d   : > { %1392 = vmatmul.f32.vlgmr.msrb.gmra.mxu2 %v2694_v19  ;;  %1599 = vmatpush.msrb.mxu0 %v2754_v3 }
 0x13e   : > { %1269 = vmatmul.f32.gmra.mxu3 %v2819_v50  ;;  %1647 = vmatpush.msrb.mxu2 %v2867_v41 }
 0x13f   : > { %1603 = vmatpush.msrb.mxu0 %v2773_v16 }
 0x140   : > { %1649 = vmatpush.msrb.mxu2 %v2855_v33  ;;  %1304 = vmatmul.f32.gmra.mxu0 %v2730_v54 }
 0x141   : > { %1341 = vmatmul.f32.vlgmr.msrb.gmra.mxu1 %v2714_v42  ;;  %v1470_v42 = vsub.f32 %v1447_v30, %v2981_v15 }
 0x142   : > { %1651 = vmatpush.msrb.mxu2 %v2859_v51  ;;  %1622 = vmatpush.msrb.mxu1 %v2724_v52 }
 0x143   : > { %v2994_v54 = vand.u32 4294901760, %v1470_v42 }
 0x144   : > { %1653 = vmatpush.msrb.mxu2 %v2865_v39  ;;  %1624 = vmatpush.msrb.mxu1 %v2707_v32 }
 0x145   : > { %1396 = vmatmul.f32.gmra.mxu2 %v2711_v18 }
 0x146   : > { %1429 = vmatmul.f32.vlgmr.msrb.gmra.mxu3 %v2694_v19  ;;  %1626 = vmatpush.msrb.mxu1 %v2709_v7  ;;  %v1472_v19 = vsub.f32 %v1470_v42, %v2994_v54 }
 0x147   : > { %1680 = vmatpush.msrb.mxu3 %v2903_v40 }
 0x148   : > { %1309 = vmatmul.f32.gmra.mxu0 %v2792_v27  ;;  %1628 = vmatpush.msrb.mxu1 %v2716_v43  ;;  %v1473_v27 = vand.u32 4294901760, %v1472_v19 }
 0x149   : > { %1686 = vmatpush.msrb.mxu3 %v2912_v0  ;;  %1347 = vmatmul.f32.gmra.mxu1 %v2757_v6 }
 0x14b   : > { %1692 = vmatpush.msrb.mxu3 %v2926_v11 }
 0x14d   : > { %1698 = vmatpush.msrb.mxu3 %v2932_v14  ;;  %1400 = vmatmul.f32.gmra.mxu2 %v2759_v12 }
 0x14e   : > { %1433 = vmatmul.f32.gmra.mxu3 %v2711_v18  ;;  %v1819_v18 = vld [vmem:[%s3163_s6] sm:$0x1] }
 0x14f   : > { %v1821_v6 = vsel %vm876_vm1, %v1819_v18, 0 }
 0x150   : > { %1314 = vmatmul.f32.gmra.mxu0 %v2832_v9 }
 0x151   : > { %1353 = vmatmul.f32.gmra.mxu1 %v2816_v47 }
 0x155   : > { %1404 = vmatmul.f32.gmra.mxu2 %v2819_v50 }
 0x156   : > { %1437 = vmatmul.f32.gmra.mxu3 %v2759_v12  ;;  %v3018_v12 = vand.u32 4294901760, %v1821_v6 }
 0x158   : > { %1474 = vmatmul.f32.vlgmr.msra.gmra.mxu0 %v1473_v27  ;;  %v3027_v47 = vsub.f32 %v1821_v6, %v3018_v12 }
 0x159   : > { %1718 = vmatpush.msra.mxu0 %v2873_v22  ;;  %1359 = vmatmul.f32.gmra.mxu1 %v2843_v24 }
 0x15b   : > { %1721 = vmatpush.msra.mxu0 %v2862_v57 }
 0x15d   : > { %1545 = vmatmul.f32.vlgmr.msra.gmra.mxu2 %v1470_v42  ;;  %1724 = vmatpush.msra.mxu0 %v2876_v35 }
 0x15e   : > { %1441 = vmatmul.f32.gmra.mxu3 %v2819_v50  ;;  %1776 = vmatpush.msra.mxu2 %v2884_v49  ;;  %v3038_v50 = vand.u32 4294901760, %v3027_v47 }
 0x15f   : > { %1727 = vmatpush.msra.mxu0 %v2887_v55 }
 0x160   : > { %1780 = vmatpush.msra.mxu2 %v2879_v48  ;;  %1605 = vmatmul.f32.vlgmr.msrb.gmra.mxu0 %v2981_v15 }
 0x161   : > { %1836 = vmatpush.msrb.mxu0 %v2724_v52  ;;  %1515 = vmatmul.f32.vlgmr.msra.gmra.mxu1 %v2981_v15 }
 0x162   : > { %1784 = vmatpush.msra.mxu2 %v2898_v36  ;;  %1747 = vmatpush.msra.mxu1 %v2867_v41 }
 0x163   : > { %1838 = vmatpush.msrb.mxu0 %v2707_v32 }
 0x164   : > { %1788 = vmatpush.msra.mxu2 %v2906_v60  ;;  %1749 = vmatpush.msra.mxu1 %v2855_v33 }
 0x165   : > { %1659 = vmatmul.f32.vlgmr.msrb.gmra.mxu2 %v1473_v27  ;;  %1840 = vmatpush.msrb.mxu0 %v2709_v7 }
 0x166   : > { %1572 = vmatmul.f32.vlgmr.msra.gmra.mxu3 %v2994_v54  ;;  %1751 = vmatpush.msra.mxu1 %v2859_v51 }
 0x167   : > { %1807 = vmatpush.msra.mxu3 %v2867_v41  ;;  %1907 = vmatpush.msrb.mxu2 %v2743_v62  ;;  %v1846_v62 = vsub.f32 %v3027_v47, %v3038_v50 }
 0x168   : > { %1842 = vmatpush.msrb.mxu0 %v2716_v43  ;;  %1753 = vmatpush.msra.mxu1 %v2865_v39 }
 0x169   : > { %1809 = vmatpush.msra.mxu3 %v2855_v33  ;;  %1910 = vmatpush.msrb.mxu2 %v2719_v44  ;;  %v1847_v44 = vand.u32 4294901760, %v1846_v62 }
 0x16a   : > { %1630 = vmatmul.f32.vlgmr.msrb.gmra.mxu1 %v2981_v15  ;;  %1730 = vmatmul.f32.vlgmr.msra.gmra.mxu0 %v1470_v42 }
 0x16b   : > { %1811 = vmatpush.msra.mxu3 %v2859_v51  ;;  %1869 = vmatpush.msrb.mxu1 %v2785_v26 }
 0x16c   : > { %1913 = vmatpush.msrb.mxu2 %v2727_v53  ;;  %1965 = vmatpush.msra.mxu0 %v2751_v2 }
 0x16d   : > { %1813 = vmatpush.msra.mxu3 %v2865_v39  ;;  %1875 = vmatpush.msrb.mxu1 %v2800_v34 }
 0x16e   : > { %1916 = vmatpush.msrb.mxu2 %v2738_v61  ;;  %1969 = vmatpush.msra.mxu0 %v2746_v63 }
 0x16f   : > { %1700 = vmatmul.f32.vlgmr.msrb.gmra.mxu3 %v2981_v15  ;;  %1790 = vmatmul.f32.vlgmr.msra.gmra.mxu2 %v2981_v15 }
 0x170   : > { %1881 = vmatpush.msrb.mxu1 %v2811_v45  ;;  %1936 = vmatpush.msrb.mxu3 %v2724_v52 }
 0x171   : > { %1973 = vmatpush.msra.mxu0 %v2754_v3  ;;  %2021 = vmatpush.msra.mxu2 %v2867_v41 }
 0x172   : > { %1887 = vmatpush.msrb.mxu1 %v2823_v56  ;;  %1938 = vmatpush.msrb.mxu3 %v2707_v32 }
 0x173   : > { %1977 = vmatpush.msra.mxu0 %v2773_v16  ;;  %2023 = vmatpush.msra.mxu2 %v2855_v33  ;;  %v915_v53 = vpop.f32.mrf.mxu0 }
 0x174   : > { %1757 = vmatmul.f32.vlgmr.msra.gmra.mxu1 %v2994_v54  ;;  %1848 = vmatmul.f32.vlgmr.msrb.gmra.mxu0 %v1847_v44 }
 0x175   : > { %1940 = vmatpush.msrb.mxu3 %v2709_v7  ;;  %1996 = vmatpush.msra.mxu1 %v2724_v52 }
 0x176   : > { %2025 = vmatpush.msra.mxu2 %v2859_v51  ;;  %2092 = vmatpush.msrb.mxu0 %v2873_v22 }
 0x177   : > { %1942 = vmatpush.msrb.mxu3 %v2716_v43  ;;  %1998 = vmatpush.msra.mxu1 %v2707_v32 }
 0x178   : > { %2027 = vmatpush.msra.mxu2 %v2865_v39  ;;  %2095 = vmatpush.msrb.mxu0 %v2862_v57 }
 0x179   : > { %1815 = vmatmul.f32.vlgmr.msra.gmra.mxu3 %v2981_v15  ;;  %1919 = vmatmul.f32.vlgmr.msrb.gmra.mxu2 %v3027_v47 }
 0x17a   : > { %2000 = vmatpush.msra.mxu1 %v2709_v7  ;;  %2054 = vmatpush.msra.mxu3 %v2903_v40 }
 0x17b   : > { %2098 = vmatpush.msrb.mxu0 %v2876_v35  ;;  %2150 = vmatpush.msrb.mxu2 %v2884_v49  ;;  %v980_v52 = vpop.f32.mrf.mxu1  ;;  %v923_v32 = vpop.f32.mrf.mxu0 }
 0x17c   : > { %2002 = vmatpush.msra.mxu1 %v2716_v43  ;;  %2060 = vmatpush.msra.mxu3 %v2912_v0  ;;  %v981_v61 = vadd.f32 %v980_v52, %v915_v53  ;;  %v1064_v63 = vpop.f32.mrf.mxu3 }
 0x17d   : > { %2101 = vmatpush.msrb.mxu0 %v2887_v55  ;;  %2154 = vmatpush.msrb.mxu2 %v2879_v48  ;;  %v1022_v7 = vpop.f32.mrf.mxu2 }
 0x17e   : > { %1889 = vmatmul.f32.vlgmr.msrb.gmra.mxu1 %v3018_v12  ;;  %2066 = vmatpush.msra.mxu3 %v2926_v11  ;;  %v1023_v2 = vadd.f32 %v1022_v7, %v981_v61 }
 0x17f   : > { %2121 = vmatpush.msrb.mxu1 %v2867_v41  ;;  %2158 = vmatpush.msrb.mxu2 %v2898_v36 }
 0x180   : > { %1979 = vmatmul.f32.vlgmr.msra.gmra.mxu0 %v3018_v12  ;;  %2072 = vmatpush.msra.mxu3 %v2932_v14  ;;  %v1065_v43 = vadd.f32 %v1064_v63, %v1023_v2 }
 0x181   : > { %2123 = vmatpush.msrb.mxu1 %v2855_v33  ;;  %2162 = vmatpush.msrb.mxu2 %v2906_v60 }
 0x182   : > { %1946 = vmatmul.f32.vlgmr.msrb.gmra.mxu3 %v3038_v50  ;;  %2033 = vmatmul.f32.vlgmr.msra.gmra.mxu2 %v1847_v44 }
 0x183   : > { %2125 = vmatpush.msrb.mxu1 %v2859_v51  ;;  %2181 = vmatpush.msrb.mxu3 %v2867_v41  ;;  %v984_v3 = vpop.f32.mrf.mxu1  ;;  %v931_v16 = vpop.f32.mrf.mxu0 }
 0x184   : > { %v985_v26 = vadd.f32 %v984_v3, %v923_v32  ;;  %v1070_v34 = vpop.f32.mrf.mxu3 }
 0x185   : > { %2127 = vmatpush.msrb.mxu1 %v2865_v39  ;;  %2183 = vmatpush.msrb.mxu3 %v2855_v33  ;;  %v1027_v45 = vpop.f32.mrf.mxu2 }
 0x186   : > { %2004 = vmatmul.f32.vlgmr.msra.gmra.mxu1 %v3018_v12  ;;  %v1028_v56 = vadd.f32 %v1027_v45, %v985_v26 }
 0x187   : > { %2185 = vmatpush.msrb.mxu3 %v2859_v51 }
 0x188   : > { %2104 = vmatmul.f32.vlgmr.msrb.gmra.mxu0 %v3027_v47  ;;  %v1071_v9 = vadd.f32 %v1070_v34, %v1028_v56 }
 0x189   : > { %2187 = vmatpush.msrb.mxu3 %v2865_v39 }
 0x18a   : > { %2074 = vmatmul.f32.vlgmr.msra.gmra.mxu3 %v3018_v12  ;;  %2164 = vmatmul.f32.vlgmr.msrb.gmra.mxu2 %v3018_v12 }
 0x18b   : > { %v988_v17 = vpop.f32.mrf.mxu1  ;;  %v939_v20 = vpop.f32.mrf.mxu0 }
 0x18c   : > { %v989_v21 = vadd.f32 %v988_v17, %v931_v16  ;;  %v1076_v23 = vpop.f32.mrf.mxu3 }
 0x18d   : > { %v1032_v24 = vpop.f32.mrf.mxu2 }
 0x18e   : > { %2131 = vmatmul.f32.vlgmr.msrb.gmra.mxu1 %v3038_v50  ;;  %v1033_v13 = vadd.f32 %v1032_v24, %v989_v21 }
 0x190   : > { %v1077_v8 = vadd.f32 %v1076_v23, %v1033_v13 }
 0x192   : > { %2189 = vmatmul.f32.vlgmr.msrb.gmra.mxu3 %v3018_v12 }
 0x193   : > { %v1115_v25 = vpop.f32.mrf.mxu0 }
 0x194   : > { %v992_v5 = vpop.f32.mrf.mxu1  ;;  %v1116_v28 = vadd.f32 %v1115_v25, %v1065_v43  ;;  %v1082_v33 = vpop.f32.mrf.mxu3 }
 0x195   : > { %v993_v29 = vadd.f32 %v992_v5, %v939_v20  ;;  %v1037_v31 = vpop.f32.mrf.mxu2 }
 0x197   : > { %v1038_v37 = vadd.f32 %v1037_v31, %v993_v29 }
 0x199   : > { %v1083_v38 = vadd.f32 %v1082_v33, %v1038_v37 }
 0x19c   : > { %v1119_v51 = vpop.f32.mrf.mxu0  ;;  %v1152_v57 = vpop.f32.mrf.mxu1 }
 0x19d   : > { %v1120_v4 = vadd.f32 %v1119_v51, %v1071_v9  ;;  %v1153_v39 = vadd.f32 %v1152_v57, %v1116_v28 }
 0x19e   : > { %v1193_v41 = vpop.f32.mrf.mxu2 }
 0x19f   : > { %v2193_v36 = vmul.f32 %v1153_v39, %v1153_v39 }
 0x1a5   : > { %v1123_v22 = vpop.f32.mrf.mxu0 }
 0x1a6   : > { %v1124_v35 = vadd.f32 %v1123_v22, %v1077_v8  ;;  %v1156_v48 = vpop.f32.mrf.mxu1 }
 0x1a7   : > { %v1157_v49 = vadd.f32 %v1156_v48, %v1120_v4  ;;  %v1258_v55 = vpop.f32.mrf.mxu3 }
 0x1a8   : > { %v1201_v58 = vpop.f32.mrf.mxu2  ;;  %v1259_v59 = vadd.f32 %v1258_v55, %v1193_v41 }
 0x1a9   : > { %v2195_v40 = vmul.f32 %v1157_v49, %v1157_v49 }
 0x1ab   : > { %v2201_v60 = vadd.f32 %v2195_v40, %v2193_v36 }
 0x1ad   : > { %v1127_v0 = vpop.f32.mrf.mxu0 }
 0x1ae   : > { %v1128_v1 = vadd.f32 %v1127_v0, %v1083_v38  ;;  %v1160_v10 = vpop.f32.mrf.mxu1 }
 0x1af   : > { %v1161_v11 = vadd.f32 %v1160_v10, %v1124_v35 }
 0x1b0   : > { %v1209_v14 = vpop.f32.mrf.mxu2  ;;  %v1262_v46 = vpop.f32.mrf.mxu3 }
 0x1b1   : > { %v2197_v30 = vmul.f32 %v1161_v11, %v1161_v11  ;;  %v1263_v15 = vadd.f32 %v1262_v46, %v1201_v58 }
 0x1b3   : > { %v2202_v42 = vadd.f32 %v2201_v60, %v2197_v30 }
 0x1b5   : > { %v1300_v54 = vpop.f32.mrf.mxu0 }
 0x1b6   : > { %v1164_v19 = vpop.f32.mrf.mxu1  ;;  %v1301_v32 = vadd.f32 %v1300_v54, %v1259_v59 }
 0x1b7   : > { %v1165_v27 = vadd.f32 %v1164_v19, %v1128_v1 }
 0x1b8   : > { %v1217_v18 = vpop.f32.mrf.mxu2  ;;  %v1266_v6 = vpop.f32.mrf.mxu3 }
 0x1b9   : > { %v2199_v12 = vmul.f32 %v1165_v27, %v1165_v27  ;;  %v1267_v34 = vadd.f32 %v1266_v6, %v1209_v14 }
 0x1bb   : > { %v3102_v47 = vadd.f32 %v2202_v42, %v2199_v12 }
 0x1bd   : > { %v1305_v62 = vpop.f32.mrf.mxu0 }
 0x1be   : > { %v1342_v50 = vpop.f32.mrf.mxu1  ;;  %v1306_v43 = vadd.f32 %v1305_v62, %v1263_v15 }
 0x1bf   : > { %v1343_v2 = vadd.f32 %v1342_v50, %v1301_v32 }
 0x1c0   : > { %v1393_v44 = vpop.f32.mrf.mxu2 }
 0x1c1   : > { %v1270_v53 = vpop.f32.mrf.mxu3  ;;  %v1394_v16 = vadd.f32 %v1393_v44, %v1343_v2 }
 0x1c2   : > { %v1271_v48 = vadd.f32 %v1270_v53, %v1217_v18  ;;  %v2233_v18 = vlaneseq }
 0x1c4   : > { %vm3107_vm3 = vcmp.lt.s32.totalorder %v2233_v18, 256 }
 0x1c5   : > { %v1310_v7 = vpop.f32.mrf.mxu0 }
 0x1c6   : > { %v1348_v52 = vpop.f32.mrf.mxu1  ;;  %v1311_v21 = vadd.f32 %v1310_v7, %v1267_v34  ;;  %v2204_v7 = vrot.slane %v3102_v47, 4 }
 0x1c7   : > { %v1349_v3 = vadd.f32 %v1348_v52, %v1306_v43 }
 0x1c8   : > { %v1397_v61 = vpop.f32.mrf.mxu2 }
 0x1c9   : > { %v1430_v63 = vpop.f32.mrf.mxu3  ;;  %v1398_v56 = vadd.f32 %v1397_v61, %v1349_v3 }
 0x1ca   : > { %v1431_v45 = vadd.f32 %v1430_v63, %v1394_v16 }
 0x1cc   : > { %v2194_v24 = vmul.f32 %v1431_v45, %v1431_v45 }
 0x1cd   : > { %v1315_v23 = vpop.f32.mrf.mxu0 }
 0x1ce   : > { %v1354_v26 = vpop.f32.mrf.mxu1  ;;  %v1316_v55 = vadd.f32 %v1315_v23, %v1271_v48 }
 0x1cf   : > { %v1355_v8 = vadd.f32 %v1354_v26, %v1311_v21  ;;  %v2205_v26 = vadd.f32 %v2204_v7, %v3102_v47 }
 0x1d0   : > { %v1401_v9 = vpop.f32.mrf.mxu2 }
 0x1d1   : > { %v1434_v17 = vpop.f32.mrf.mxu3  ;;  %v1402_v28 = vadd.f32 %v1401_v9, %v1355_v8  ;;  %v2206_v9 = vrot.slane %v2205_v26, 2 }
 0x1d2   : > { %v1435_v20 = vadd.f32 %v1434_v17, %v1398_v56 }
 0x1d4   : > { %v2196_v13 = vmul.f32 %v1435_v20, %v1435_v20 }
 0x1d5   : > { %v1475_v37 = vpop.f32.mrf.mxu0 }
 0x1d6   : > { %v2210_v25 = vadd.f32 %v2196_v13, %v2194_v24  ;;  %v1360_v5 = vpop.f32.mrf.mxu1  ;;  %v2207_v13 = vadd.f32 %v2206_v9, %v2205_v26 }
 0x1d7   : > { %v1361_v58 = vadd.f32 %v1360_v5, %v1316_v55 }
 0x1d8   : > { %v1405_v31 = vpop.f32.mrf.mxu2 }
 0x1d9   : > { %v1438_v29 = vpop.f32.mrf.mxu3  ;;  %v1406_v40 = vadd.f32 %v1405_v31, %v1361_v58 }
 0x1da   : > { %v1439_v33 = vadd.f32 %v1438_v29, %v1402_v28 }
 0x1dc   : > { %v2198_v38 = vmul.f32 %v1439_v33, %v1439_v33  ;;  %v2208_v33 = vrot.slane %v2207_v13, 1 }
 0x1dd   : > { %v1606_v41 = vpop.f32.mrf.mxu0 }
 0x1de   : > { %v2211_v51 = vadd.f32 %v2210_v25, %v2198_v38  ;;  %v1516_v57 = vpop.f32.mrf.mxu1 }
 0x1df   : > { %v1517_v36 = vadd.f32 %v1516_v57, %v1475_v37 }
 0x1e0   : > { %v1546_v39 = vpop.f32.mrf.mxu2 }
 0x1e1   : > { %v1442_v4 = vpop.f32.mrf.mxu3  ;;  %v1547_v11 = vadd.f32 %v1546_v39, %v1517_v36 }
 0x1e2   : > { %v1443_v10 = vadd.f32 %v1442_v4, %v1406_v40  ;;  %v2209_v4 = vadd.f32 %v2208_v33, %v2207_v13 }
 0x1e4   : > { %v2200_v42 = vmul.f32 %v1443_v10, %v1443_v10 }
 0x1e6   : > { %v2212_v6 = vadd.f32 %v2211_v51, %v2200_v42 }
 0x1e7   : > { %v1631_v35 = vpop.f32.mrf.mxu1  ;;  %v1731_v59 = vpop.f32.mrf.mxu0 }
 0x1e8   : > { %v1660_v49 = vpop.f32.mrf.mxu2  ;;  %v2213_v61 = vrot.slane %v2212_v6, 4 }
 0x1e9   : > { %v1573_v22 = vpop.f32.mrf.mxu3 }
 0x1ea   : > { %v1574_v30 = vadd.f32 %v1573_v22, %v1547_v11  ;;  %v2214_v43 = vadd.f32 %v2213_v61, %v2212_v6 }
 0x1ec   : > { %v1607_v27 = vadd.f32 %v1606_v41, %v1574_v30  ;;  %v2215_v56 = vrot.slane %v2214_v43, 2  ;;  %v2220_v41 = vstv %s2219_s20 }
 0x1ee   : > { %v1632_v44 = vadd.f32 %v1631_v35, %v1607_v27  ;;  %v2216_v20 = vadd.f32 %v2215_v56, %v2214_v43 }
 0x1f0   : > { %v2217_v29 = vrot.slane %v2216_v20, 1 }
 0x1f1   : > { %v1758_v1 = vpop.f32.mrf.mxu1  ;;  %v1849_v19 = vpop.f32.mrf.mxu0 }
 0x1f2   : > { %v1701_v60 = vpop.f32.mrf.mxu3  ;;  %v1791_v46 = vpop.f32.mrf.mxu2  ;;  %v2218_v51 = vadd.f32 %v2217_v29, %v2216_v20 }
 0x1f3   : > { %v1702_v0 = vadd.f32 %v1701_v60, %v1660_v49  ;;  %v2221_v49 = vsub.f32 %v2220_v41, %v2209_v4 }
 0x1f4   : > { %v2222_v35 = vsub.f32 %v2220_v41, %v2218_v51 }
 0x1f5   : > { %v1732_v14 = vadd.f32 %v1731_v59, %v1702_v0 }
 0x1f7   : > { %v1759_v15 = vadd.f32 %v1758_v1, %v1732_v14 }
 0x1f9   : > { %v1792_v54 = vadd.f32 %v1791_v46, %v1759_v15 }
 0x1fb   : > { %v1890_v62 = vpop.f32.mrf.mxu1 }
 0x1fc   : > { %v1816_v12 = vpop.f32.mrf.mxu3  ;;  %v1920_v52 = vpop.f32.mrf.mxu2  ;;  %v1891_v34 = vadd.f32 %v1890_v62, %v1849_v19 }
 0x1fd   : > { %v1817_v50 = vadd.f32 %v1816_v12, %v1792_v54  ;;  %v1980_v2 = vpop.f32.mrf.mxu0 }
 0x1fe   : > { %v1921_v17 = vadd.f32 %v1920_v52, %v1891_v34 }
 0x1ff   : > { %v2229_v53 = vrot.slane %v1817_v50, 7 }
 0x201   : > { %v2231_v63 = vsel %vm2230_vm2, %v1632_v44, %v2229_v53 }
 0x202   : > { %2237 = vst.msk [vmem:[%s3113_s19] ss:$2 sm:$0x3] %vm3107_vm3, %v2231_v63 }
 0x203   : > { %v2005_v16 = vpop.f32.mrf.mxu1 }
 0x205   : > { %v1947_v3 = vpop.f32.mrf.mxu3  ;;  %v2034_v45 = vpop.f32.mrf.mxu2 }
 0x206   : > { %v1948_v21 = vadd.f32 %v1947_v3, %v1921_v17  ;;  %v2105_v24 = vpop.f32.mrf.mxu0 }
 0x208   : > { %v1981_v5 = vadd.f32 %v1980_v2, %v1948_v21 }
 0x20a   : > { %v2006_v37 = vadd.f32 %v2005_v16, %v1981_v5 }
 0x20b   : > { %v2132_v25 = vpop.f32.mrf.mxu1 }
 0x20c   : > { %v2223_v22 = vmul.f32 %v2006_v37, %v2006_v37 }
 0x20d   : > { %v2075_v23 = vpop.f32.mrf.mxu3  ;;  %v2165_v31 = vpop.f32.mrf.mxu2 }
 0x20e   : > { %v2076_v8 = vadd.f32 %v2075_v23, %v2034_v45  ;;  %v2225_v58 = vadd.f32 %v2223_v22, %v2221_v49 }
 0x210   : > { %v2106_v28 = vadd.f32 %v2105_v24, %v2076_v8 }
 0x212   : > { %v2133_v47 = vadd.f32 %v2132_v25, %v2106_v28 }
 0x214   : > { %v2166_v38 = vadd.f32 %v2165_v31, %v2133_v47 }
 0x215   : > { %v2190_v57 = vpop.f32.mrf.mxu3 }
 0x216   : > { %v2191_v39 = vadd.f32 %v2190_v57, %v2166_v38 }
 0x218   : > { %v2224_v48 = vmul.f32 %v2191_v39, %v2191_v39 }
 0x21a   : > { %v2226_v55 = vadd.f32 %v2224_v48, %v2222_v35 }
 0x21c   : > { %v2240_v59 = vrot.slane %v2226_v55, 7 }
 0x21e   : > { %v2241_v36 = vsel %vm2230_vm2, %v2225_v58, %v2240_v59 }
 0x21f   : > { %2328 = vst.msk [vmem:[%s3113_s19 + $0x1] ss:$2 sm:$0x3] %vm3107_vm3, %v2241_v36 }
 0x220   : > { %2420 = shalt.err (!%p2417_p3)
}
 0x221   : > { %2335 = dma.vmem_to_hbm [thread:$0]  (%p2539_p5), %s2260_s25, 64, %s2262_s30, %s2246_s0  }
 0x222 PF: > { %p2341_p4 = scmp.ge.s32.totalorder %s2455_s29, 2  ;;  %s2273_s17 = sand.u32 1, %s2443_s26  }
 0x223   : > { %s2274_s19 = scalar_lea.sflag [#allocation4], %s2273_s17 }
 0x224   : > { %p2338_p7 = pnand %p2341_p4, %p2543_p6 }
 0x226   : > { %p2339_p8 = pneg %p2338_p7 }
 0x228   : > { %2438 = dma.done.wait (%p2339_p8), %s2274_s19, 64  }
 0x229   : > { %2440 = vsyncadd (%p2339_p8), %s2274_s19, 4294967232  ;;  %p18_p9 = scmp.ge.s32.totalorder %s2526_s8, 4   ;;  %s3169_s26 = smov %s2447_s27 }
 0x22a   : > { %s3170_s27 = smov %s2451_s28  ;;  %s3171_s28 = smov %s2537_s11 }
 0x22b   : > { %s3172_s29 = smov %s2526_s8  ;;  %20 = sbr.rel (!%p18_p9) target bundleno = 5 (0x5), region = 84 }
 0x230   :  { %2280 = vsyncpa [#allocation4], 1 }
 0x231   :  { %2282 = vsyncpa [#allocation4 + $0x1], 1 }

</bundles_post_ra>
